<compile_context>
chip_gen: v7x
topology: tpu7x:2x2x1
jax: 0.10.0
libtpu: 0.0.40
codegen_flags: <defaults>
</compile_context>

<pallas_src>
import functools

import numpy as np

import jax
import jax.numpy as jnp
from jax.experimental import pallas as pl
from jax.experimental.pallas import tpu as pltpu


# ---------------------------------------------------------------------------
# Kernel
# ---------------------------------------------------------------------------
def _fused_multiscale_kernel(x_ref, w_ref, b_ref, o_ref, xpad_ref, col_ref, *,
                             seq_len, tile_rows, channels, pad_max,
                             window_size_list, tap_offsets):
    """Fused multi-scale conv for one (batch, L-tile) grid step.

    x_ref:    (1, L, C)          full input sequence of this batch element
    w_ref:    (k_total*C, C)     packed im2col weights; rows [(off+j)*C:(off+j+1)*C] = W_s[:, :, j].T
    b_ref:    (G-1, C)           packed biases
    o_ref:    (1, G, TL, C)      lane-dense output tile (slot 0 = identity)
    xpad_ref: (L + 2*p_max, C)   scratch: prefix/suffix-padded sequence
    col_ref:  (TL, k_max*C)      scratch: im2col tile
    """
    L, TL, C, p_max = seq_len, tile_rows, channels, pad_max
    l = pl.program_id(1)
    t0 = l * TL
    if TL % 8 == 0:
        t0 = pl.multiple_of(t0, 8)          # sublane-aligned tile starts

    # Padded-sequence BODY: written once per batch element.  The l axis is
    # "arbitrary" (sequential per core), so l == 0 always runs before the
    # other tiles of this batch element and the scratch persists across them.
    @pl.when(l == 0)
    def _():
        xpad_ref[p_max:p_max + L, :] = x_ref[0]

    # Scale slot 0: identity copy of this L-tile.
    o_ref[0, 0, :, :] = x_ref[0, pl.ds(t0, TL), :]

    # Statically unrolled over scales; one big-K MXU dot per scale.
    for s, (k, off) in enumerate(zip(window_size_list, tap_offsets)):
        p = (k - 1) // 2
        if p > 0:
            # Per-scale edge rows (torch.cat([x[:p], x, x[-p:]]) semantics).
            # Different scales need different content at overlapping rows, so
            # they are rewritten right before this scale's reads (2*p rows,
            # negligible traffic).  Note: x[0:p], NOT a slice of a larger pad.
            xpad_ref[p_max - p:p_max, :] = x_ref[0, 0:p, :]
            xpad_ref[p_max + L:p_max + L + p, :] = x_ref[0, L - p:L, :]

        # im2col: column block j holds xpad_s[t0 + j : t0 + j + TL].
        base = t0 + (p_max - p)
        for j in range(k):
            col_ref[:, j * C:(j + 1) * C] = xpad_ref[pl.ds(base + j, TL), :]

        # Single MXU contraction with K = k*C, f32 accumulation.
        acc = jnp.dot(col_ref[:, :k * C],
                      w_ref[off * C:(off + k) * C, :],
                      preferred_element_type=jnp.float32)
        acc = acc + b_ref[s, :][None, :].astype(jnp.float32)
        o_ref[0, s + 1, :, :] = acc.astype(o_ref.dtype)


# ---------------------------------------------------------------------------
# Tiling / VMEM heuristics
# ---------------------------------------------------------------------------
def _vmem_limit_bytes():
    """~75% of physical VMEM (v7x 64 MiB -> 48 MiB; v5e/v6e 128 MiB -> 96 MiB)."""
    phys = None
    try:
        phys = getattr(pltpu.get_tpu_info(), "vmem_capacity_bytes", None)
    except Exception:
        phys = None
    if not phys:
        phys = 64 * 1024 * 1024          # conservative (v7x-sized) default
    return int(min(phys * 3 // 4, 100 * 1024 * 1024))


def _select_tile_rows(L, C, G, k_max, itemsize, vmem_limit_bytes):
    """Pick the L-tile length: a multiple of 8 dividing L, as large as fits."""
    # Larger tiles amortize the ~0.35us per-grid-step overhead; cap lower on
    # 64 MiB-VMEM parts (v7x) than on 128 MiB parts (v5e/v6e).
    cap = 512 if vmem_limit_bytes <= 48 * 1024 * 1024 else 1024
    cap = min(cap, L)
    if L <= 8 or cap < 8:
        return L

    def largest_div8_below(n):
        for cand in range(n - n % 8, 7, -8):
            if L % cand == 0:
                return cand
        return None

    tl = largest_div8_below(cap)
    if tl is None:
        # TODO(synk): pad/mask a ragged tail instead of falling back to full L.
        return L

    # Keep (double-buffered out tile + im2col tile + f32 acc) under ~half the
    # limit, leaving room for resident x, the weight slab and the padded body.
    def tile_bytes(t):
        return (2 * G * t * C + t * k_max * C) * itemsize + t * C * 4

    while tl > 8 and tile_bytes(tl) > vmem_limit_bytes // 2:
        nxt = largest_div8_below(tl - 8)
        if nxt is None:
            break
        tl = nxt
    return tl


# ---------------------------------------------------------------------------
# Wrapper
# ---------------------------------------------------------------------------
def multi_scale_conv_extractor(x, params, window_size_list, *,
                               single_buffer_params=True, return_bclg=True):
    """MultiScaleConvExtractor.forward.

    x:      (B, L, C) float32
    params: list of (weight (C, C, k), bias (C,)) in PyTorch Conv1d layout.
    returns (B, C, L, G) with G = len(window_size_list) + 1
            (or the kernel-native (B, G, L, C) if return_bclg=False).
    """
    B, L, C = x.shape
    assert len(window_size_list) >= 1 and len(params) == len(window_size_list)
    G = len(window_size_list) + 1

    p_list = []
    for k in window_size_list:
        assert k % 2 == 1 and k >= 1, "module is only length-preserving for odd k"
        p = (k - 1) // 2
        assert p <= L, "sequence shorter than half the window is unsupported"
        p_list.append(p)
    p_max = max(p_list)
    k_max = max(window_size_list)
    k_total = sum(window_size_list)

    # Pack every scale's taps into one (k_total*C, C) im2col weight slab:
    # rows [(off_s + j)*C : (off_s + j + 1)*C] = W_s[:, :, j].T
    w_slabs, tap_offsets, off = [], [], 0
    for (w, _), k in zip(params, window_size_list):
        w_slabs.append(jnp.transpose(w, (2, 1, 0)).reshape(k * C, C))
        tap_offsets.append(off)
        off += k
    w_packed = jnp.concatenate(w_slabs, axis=0)              # (k_total*C, C)
    b_packed = jnp.stack([b for (_, b) in params], axis=0)   # (G-1, C)

    itemsize = jnp.dtype(x.dtype).itemsize
    vmem_limit = _vmem_limit_bytes()
    TL = _select_tile_rows(L, C, G, k_max, itemsize, vmem_limit)
    num_l_tiles = L // TL

    kernel = functools.partial(
        _fused_multiscale_kernel,
        seq_len=L, tile_rows=TL, channels=C, pad_max=p_max,
        window_size_list=tuple(window_size_list),
        tap_offsets=tuple(tap_offsets))

    # Constant-index-map operands: a second pipeline buffer would be dead VMEM.
    resident = dict(pipeline_mode=pl.Buffered(1)) if single_buffer_params else {}

    out_bglc = pl.pallas_call(
        kernel,
        out_shape=jax.ShapeDtypeStruct((B, G, L, C), x.dtype),
        grid_spec=pltpu.PrefetchScalarGridSpec(
            num_scalar_prefetch=0,
            grid=(B, num_l_tiles),
            in_specs=[
                # Full sequence of one batch element, resident across L-tiles.
                pl.BlockSpec((1, L, C), lambda b, l: (b, 0, 0)),
                # Packed weights / biases, resident across the whole grid.
                pl.BlockSpec((k_total * C, C), lambda b, l: (0, 0), **resident),
                pl.BlockSpec((G - 1, C), lambda b, l: (0, 0), **resident),
            ],
            out_specs=pl.BlockSpec((1, G, TL, C), lambda b, l: (b, 0, l, 0)),
            scratch_shapes=[
                pltpu.VMEM((L + 2 * p_max, C), x.dtype),   # padded sequence
                pltpu.VMEM((TL, k_max * C), x.dtype),      # im2col tile
            ]),
        compiler_params=pltpu.CompilerParams(
            # b: megacore-shardable; l: sequential (xpad scratch carries
            # the padded body across L-tiles of the same batch element).
            dimension_semantics=("parallel", "arbitrary"),
            vmem_limit_bytes=vmem_limit),
    )(x, w_packed, b_packed)

    if not return_bclg:
        return out_bglc
    # PyTorch layout (B, C, L, G): one relayout outside the kernel so the
    # kernel's stores stay lane-dense (C on lanes, not G).
    return jnp.transpose(out_bglc, (0, 3, 2, 1))


# ---------------------------------------------------------------------------
# Exact (float64, host-side) reference of the PyTorch semantics
# ---------------------------------------------------------------------------
def _reference_f64(x, params, window_size_list):
    x64 = np.asarray(x, dtype=np.float64)
    B, L, C = x64.shape
    seqs = [x64]
    for (w, b), k in zip(params, window_size_list):
        w64 = np.asarray(w, dtype=np.float64)   # (C_out, C_in, k)
        b64 = np.asarray(b, dtype=np.float64)
        p = (k - 1) // 2
        if p > 0:
            xpad = np.concatenate([x64[:, :p, :], x64, x64[:, L - p:, :]], axis=1)
        else:
            xpad = x64
        out = np.zeros((B, L, C), np.float64)
        for j in range(k):
            out += np.einsum("blc,oc->blo", xpad[:, j:j + L, :], w64[:, :, j])
        out += b64[None, None, :]
        seqs.append(out)
    stacked = np.stack(seqs, axis=-1)            # (B, L, C, G)
    return np.transpose(stacked, (0, 2, 1, 3))   # (B, C, L, G)


if __name__ == "__main__":
    # Small shapes: B=2, L=16, C=8, scales [3, 5] -> output (2, 8, 16, 3).
    B, L, C = 2, 16, 8
    window_size_list = (3, 5)

    key = jax.random.PRNGKey(0)
    kx, kp = jax.random.split(key)
    x = jax.random.normal(kx, (B, L, C), dtype=jnp.float32)

    # Deterministic Conv1d parameters, mimicking PyTorch's fan-in uniform init.
    params = []
    for i, k in enumerate(window_size_list):
        kw, kb = jax.random.split(jax.random.fold_in(kp, i))
        bound = 1.0 / (C * k) ** 0.5
        weight = jax.random.uniform(kw, (C, C, k), jnp.float32, -bound, bound)
        bias = jax.random.uniform(kb, (C,), jnp.float32, -bound, bound)
        params.append((weight, bias))

    run = jax.jit(functools.partial(multi_scale_conv_extractor,
                                    window_size_list=window_size_list))
    try:
        out = jax.block_until_ready(run(x, params))
    except Exception:
        # Fallback in case this JAX build rejects pl.Buffered(1) single-buffering.
        run = jax.jit(functools.partial(multi_scale_conv_extractor,
                                        window_size_list=window_size_list,
                                        single_buffer_params=False))
        out = jax.block_until_ready(run(x, params))

    ref = _reference_f64(x, params, window_size_list)
    G = len(window_size_list) + 1
    assert out.shape == (B, C, L, G), out.shape
    # Tolerance leaves room for the MXU's reduced-precision f32 passes under
    # default matmul precision; genuine layout/padding bugs are O(0.1-1) and
    # would still be caught.
    err = np.max(np.abs(np.asarray(out, dtype=np.float64) - ref))
    assert np.allclose(np.asarray(out, dtype=np.float64), ref,
                       atol=5e-3, rtol=1e-3), f"mismatch vs reference: {err}"

    print("KERNEL_OK")
</pallas_src>

<mosaic_0001>
module attributes {stable_mosaic.version = 11 : i64} {
  func.func @_fused_multiscale_kernel(%arg0: i32, %arg1: i32, %arg2: memref<1x16x8xf32, #tpu.memory_space<vmem>>, %arg3: memref<64x8xf32, #tpu.memory_space<vmem>>, %arg4: memref<2x8xf32, #tpu.memory_space<vmem>>, %arg5: memref<1x3x16x8xf32, #tpu.memory_space<vmem>>, %arg6: memref<20x8xf32, #tpu.memory_space<vmem>>, %arg7: memref<16x40xf32, #tpu.memory_space<vmem>>) attributes {dimension_semantics = [#tpu.dimension_semantics<parallel>, #tpu.dimension_semantics<arbitrary>], iteration_bounds = array<i64: 2, 1>, scalar_prefetch = 0 : i64, scratch_operands = 2 : i64, tpu.core_type = #tpu.core_type<tc>, window_params = [{transform_indices = @transform_0, window_bounds = array<i64: 1, 16, 8>}, {pipeline_mode = #tpu.pipeline_mode<synchronous>, transform_indices = @transform_1, window_bounds = array<i64: 64, 8>}, {pipeline_mode = #tpu.pipeline_mode<synchronous>, transform_indices = @transform_2, window_bounds = array<i64: 2, 8>}, {transform_indices = @transform_3, window_bounds = array<i64: 1, 3, 16, 8>}]} {
    %c16_i32 = arith.constant 16 : i32
    %0 = arith.muli %arg1, %c16_i32 : i32
    %1 = tpu.assume_multiple %0, 8 : i32
    %c0_i32 = arith.constant 0 : i32
    %2 = arith.cmpi eq, %arg1, %c0_i32 : i32
    %3 = arith.extui %2 : i1 to i32
    %c0_i32_0 = arith.constant 0 : i32
    %4 = arith.cmpi ne, %3, %c0_i32_0 : i32
    scf.if %4 {
      %c0_68 = arith.constant 0 : index
      %c0_69 = arith.constant 0 : index
      %c0_70 = arith.constant 0 : index
      %79 = vector.load %arg2[%c0_68, %c0_69, %c0_70] : memref<1x16x8xf32, #tpu.memory_space<vmem>>, vector<1x16x8xf32>
      %80 = vector.shape_cast %79 : vector<1x16x8xf32> to vector<16x8xf32>
      %c2_71 = arith.constant 2 : index
      %c0_72 = arith.constant 0 : index
      %81 = vector.load %arg6[%c2_71, %c0_72] : memref<20x8xf32, #tpu.memory_space<vmem>>, vector<16x8xf32>
      tpu.vector_store %arg6[%c2_71, %c0_72], %80 {strides = array<i32>} : memref<20x8xf32, #tpu.memory_space<vmem>>, vector<16x8xf32>,
    } else {
    }
    %c0 = arith.constant 0 : index
    %5 = arith.index_cast %1 : i32 to index
    %c0_1 = arith.constant 0 : index
    %6 = vector.load %arg2[%c0, %5, %c0_1] : memref<1x16x8xf32, #tpu.memory_space<vmem>>, vector<1x16x8xf32>
    %7 = vector.shape_cast %6 : vector<1x16x8xf32> to vector<16x8xf32>
    %c0_2 = arith.constant 0 : index
    %c0_3 = arith.constant 0 : index
    %c0_4 = arith.constant 0 : index
    %c0_5 = arith.constant 0 : index
    %8 = vector.load %arg5[%c0_2, %c0_3, %c0_4, %c0_5] : memref<1x3x16x8xf32, #tpu.memory_space<vmem>>, vector<1x1x16x8xf32>
    %9 = vector.shape_cast %8 : vector<1x1x16x8xf32> to vector<16x8xf32>
    %10 = vector.shape_cast %7 : vector<16x8xf32> to vector<1x1x16x8xf32>
    tpu.vector_store %arg5[%c0_2, %c0_3, %c0_4, %c0_5], %10 {strides = array<i32>} : memref<1x3x16x8xf32, #tpu.memory_space<vmem>>, vector<1x1x16x8xf32>,
    %c0_6 = arith.constant 0 : index
    %c0_7 = arith.constant 0 : index
    %c0_8 = arith.constant 0 : index
    %11 = vector.load %arg2[%c0_6, %c0_7, %c0_8] : memref<1x16x8xf32, #tpu.memory_space<vmem>>, vector<1x1x8xf32>
    %12 = vector.shape_cast %11 : vector<1x1x8xf32> to vector<1x8xf32>
    %c1 = arith.constant 1 : index
    %c0_9 = arith.constant 0 : index
    %13 = vector.load %arg6[%c1, %c0_9] : memref<20x8xf32, #tpu.memory_space<vmem>>, vector<1x8xf32>
    tpu.vector_store %arg6[%c1, %c0_9], %12 {strides = array<i32>} : memref<20x8xf32, #tpu.memory_space<vmem>>, vector<1x8xf32>,
    %c0_10 = arith.constant 0 : index
    %c15 = arith.constant 15 : index
    %c0_11 = arith.constant 0 : index
    %14 = vector.load %arg2[%c0_10, %c15, %c0_11] : memref<1x16x8xf32, #tpu.memory_space<vmem>>, vector<1x1x8xf32>
    %15 = vector.shape_cast %14 : vector<1x1x8xf32> to vector<1x8xf32>
    %c18 = arith.constant 18 : index
    %c0_12 = arith.constant 0 : index
    %16 = vector.load %arg6[%c18, %c0_12] : memref<20x8xf32, #tpu.memory_space<vmem>>, vector<1x8xf32>
    tpu.vector_store %arg6[%c18, %c0_12], %15 {strides = array<i32>} : memref<20x8xf32, #tpu.memory_space<vmem>>, vector<1x8xf32>,
    %c1_i32 = arith.constant 1 : i32
    %17 = arith.addi %1, %c1_i32 : i32
    %c0_i32_13 = arith.constant 0 : i32
    %18 = arith.addi %17, %c0_i32_13 : i32
    %19 = arith.index_cast %18 : i32 to index
    %c0_14 = arith.constant 0 : index
    %20 = vector.load %arg6[%19, %c0_14] : memref<20x8xf32, #tpu.memory_space<vmem>>, vector<16x8xf32>
    %c0_15 = arith.constant 0 : index
    %c0_16 = arith.constant 0 : index
    %21 = vector.load %arg7[%c0_15, %c0_16] : memref<16x40xf32, #tpu.memory_space<vmem>>, vector<16x8xf32>
    tpu.vector_store %arg7[%c0_15, %c0_16], %20 {strides = array<i32>} : memref<16x40xf32, #tpu.memory_space<vmem>>, vector<16x8xf32>,
    %c1_i32_17 = arith.constant 1 : i32
    %22 = arith.addi %17, %c1_i32_17 : i32
    %23 = arith.index_cast %22 : i32 to index
    %c0_18 = arith.constant 0 : index
    %24 = vector.load %arg6[%23, %c0_18] : memref<20x8xf32, #tpu.memory_space<vmem>>, vector<16x8xf32>
    %c0_19 = arith.constant 0 : index
    %c8 = arith.constant 8 : index
    %25 = vector.load %arg7[%c0_19, %c8] : memref<16x40xf32, #tpu.memory_space<vmem>>, vector<16x8xf32>
    tpu.vector_store %arg7[%c0_19, %c8], %24 {strides = array<i32>} : memref<16x40xf32, #tpu.memory_space<vmem>>, vector<16x8xf32>,
    %c2_i32 = arith.constant 2 : i32
    %26 = arith.addi %17, %c2_i32 : i32
    %27 = arith.index_cast %26 : i32 to index
    %c0_20 = arith.constant 0 : index
    %28 = vector.load %arg6[%27, %c0_20] : memref<20x8xf32, #tpu.memory_space<vmem>>, vector<16x8xf32>
    %c0_21 = arith.constant 0 : index
    %c16 = arith.constant 16 : index
    %29 = vector.load %arg7[%c0_21, %c16] : memref<16x40xf32, #tpu.memory_space<vmem>>, vector<16x8xf32>
    tpu.vector_store %arg7[%c0_21, %c16], %28 {strides = array<i32>} : memref<16x40xf32, #tpu.memory_space<vmem>>, vector<16x8xf32>,
    %c0_22 = arith.constant 0 : index
    %c0_23 = arith.constant 0 : index
    %30 = vector.load %arg7[%c0_22, %c0_23] : memref<16x40xf32, #tpu.memory_space<vmem>>, vector<16x24xf32>
    %c0_24 = arith.constant 0 : index
    %c0_25 = arith.constant 0 : index
    %31 = vector.load %arg3[%c0_24, %c0_25] : memref<64x8xf32, #tpu.memory_space<vmem>>, vector<24x8xf32>
    %cst = arith.constant dense<0.000000e+00> : vector<16x8xf32>
    %32 = tpu.matmul %30, %31, %cst {dimension_numbers = #tpu.dot_dimension_numbers<[1], [0], [0], [1], [0, 0, 1, 1], [], []>} : vector<16x24xf32>, vector<24x8xf32>, vector<16x8xf32> -> vector<16x8xf32>
    %c0_26 = arith.constant 0 : index
    %c0_27 = arith.constant 0 : index
    %33 = vector.load %arg4[%c0_26, %c0_27] : memref<2x8xf32, #tpu.memory_space<vmem>>, vector<1x8xf32>
    %34 = vector.shape_cast %33 : vector<1x8xf32> to vector<8xf32>
    %35 = vector.shape_cast %34 : vector<8xf32> to vector<1x8xf32>
    %36 = vector.broadcast %35 : vector<1x8xf32> to vector<16x8xf32>
    %37 = arith.addf %32, %36 : vector<16x8xf32>
    %c0_28 = arith.constant 0 : index
    %c1_29 = arith.constant 1 : index
    %c0_30 = arith.constant 0 : index
    %c0_31 = arith.constant 0 : index
    %38 = vector.load %arg5[%c0_28, %c1_29, %c0_30, %c0_31] : memref<1x3x16x8xf32, #tpu.memory_space<vmem>>, vector<1x1x16x8xf32>
    %39 = vector.shape_cast %38 : vector<1x1x16x8xf32> to vector<16x8xf32>
    %40 = vector.shape_cast %37 : vector<16x8xf32> to vector<1x1x16x8xf32>
    tpu.vector_store %arg5[%c0_28, %c1_29, %c0_30, %c0_31], %40 {strides = array<i32>} : memref<1x3x16x8xf32, #tpu.memory_space<vmem>>, vector<1x1x16x8xf32>,
    %c0_32 = arith.constant 0 : index
    %c0_33 = arith.constant 0 : index
    %c0_34 = arith.constant 0 : index
    %41 = vector.load %arg2[%c0_32, %c0_33, %c0_34] : memref<1x16x8xf32, #tpu.memory_space<vmem>>, vector<1x2x8xf32>
    %42 = vector.shape_cast %41 : vector<1x2x8xf32> to vector<2x8xf32>
    %c0_35 = arith.constant 0 : index
    %c0_36 = arith.constant 0 : index
    %43 = vector.load %arg6[%c0_35, %c0_36] : memref<20x8xf32, #tpu.memory_space<vmem>>, vector<2x8xf32>
    tpu.vector_store %arg6[%c0_35, %c0_36], %42 {strides = array<i32>} : memref<20x8xf32, #tpu.memory_space<vmem>>, vector<2x8xf32>,
    %c0_37 = arith.constant 0 : index
    %c14 = arith.constant 14 : index
    %c0_38 = arith.constant 0 : index
    %44 = vector.load %arg2[%c0_37, %c14, %c0_38] : memref<1x16x8xf32, #tpu.memory_space<vmem>>, vector<1x2x8xf32>
    %45 = vector.shape_cast %44 : vector<1x2x8xf32> to vector<2x8xf32>
    %c18_39 = arith.constant 18 : index
    %c0_40 = arith.constant 0 : index
    %46 = vector.load %arg6[%c18_39, %c0_40] : memref<20x8xf32, #tpu.memory_space<vmem>>, vector<2x8xf32>
    tpu.vector_store %arg6[%c18_39, %c0_40], %45 {strides = array<i32>} : memref<20x8xf32, #tpu.memory_space<vmem>>, vector<2x8xf32>,
    %c0_i32_41 = arith.constant 0 : i32
    %47 = arith.addi %1, %c0_i32_41 : i32
    %c0_i32_42 = arith.constant 0 : i32
    %48 = arith.addi %47, %c0_i32_42 : i32
    %49 = arith.index_cast %48 : i32 to index
    %c0_43 = arith.constant 0 : index
    %50 = vector.load %arg6[%49, %c0_43] : memref<20x8xf32, #tpu.memory_space<vmem>>, vector<16x8xf32>
    %c0_44 = arith.constant 0 : index
    %c0_45 = arith.constant 0 : index
    %51 = vector.load %arg7[%c0_44, %c0_45] : memref<16x40xf32, #tpu.memory_space<vmem>>, vector<16x8xf32>
    tpu.vector_store %arg7[%c0_44, %c0_45], %50 {strides = array<i32>} : memref<16x40xf32, #tpu.memory_space<vmem>>, vector<16x8xf32>,
    %c1_i32_46 = arith.constant 1 : i32
    %52 = arith.addi %47, %c1_i32_46 : i32
    %53 = arith.index_cast %52 : i32 to index
    %c0_47 = arith.constant 0 : index
    %54 = vector.load %arg6[%53, %c0_47] : memref<20x8xf32, #tpu.memory_space<vmem>>, vector<16x8xf32>
    %c0_48 = arith.constant 0 : index
    %c8_49 = arith.constant 8 : index
    %55 = vector.load %arg7[%c0_48, %c8_49] : memref<16x40xf32, #tpu.memory_space<vmem>>, vector<16x8xf32>
    tpu.vector_store %arg7[%c0_48, %c8_49], %54 {strides = array<i32>} : memref<16x40xf32, #tpu.memory_space<vmem>>, vector<16x8xf32>,
    %c2_i32_50 = arith.constant 2 : i32
    %56 = arith.addi %47, %c2_i32_50 : i32
    %57 = arith.index_cast %56 : i32 to index
    %c0_51 = arith.constant 0 : index
    %58 = vector.load %arg6[%57, %c0_51] : memref<20x8xf32, #tpu.memory_space<vmem>>, vector<16x8xf32>
    %c0_52 = arith.constant 0 : index
    %c16_53 = arith.constant 16 : index
    %59 = vector.load %arg7[%c0_52, %c16_53] : memref<16x40xf32, #tpu.memory_space<vmem>>, vector<16x8xf32>
    tpu.vector_store %arg7[%c0_52, %c16_53], %58 {strides = array<i32>} : memref<16x40xf32, #tpu.memory_space<vmem>>, vector<16x8xf32>,
    %c3_i32 = arith.constant 3 : i32
    %60 = arith.addi %47, %c3_i32 : i32
    %61 = arith.index_cast %60 : i32 to index
    %c0_54 = arith.constant 0 : index
    %62 = vector.load %arg6[%61, %c0_54] : memref<20x8xf32, #tpu.memory_space<vmem>>, vector<16x8xf32>
    %c0_55 = arith.constant 0 : index
    %c24 = arith.constant 24 : index
    %63 = vector.load %arg7[%c0_55, %c24] : memref<16x40xf32, #tpu.memory_space<vmem>>, vector<16x8xf32>
    tpu.vector_store %arg7[%c0_55, %c24], %62 {strides = array<i32>} : memref<16x40xf32, #tpu.memory_space<vmem>>, vector<16x8xf32>,
    %c4_i32 = arith.constant 4 : i32
    %64 = arith.addi %47, %c4_i32 : i32
    %65 = arith.index_cast %64 : i32 to index
    %c0_56 = arith.constant 0 : index
    %66 = vector.load %arg6[%65, %c0_56] : memref<20x8xf32, #tpu.memory_space<vmem>>, vector<16x8xf32>
    %c0_57 = arith.constant 0 : index
    %c32 = arith.constant 32 : index
    %67 = vector.load %arg7[%c0_57, %c32] : memref<16x40xf32, #tpu.memory_space<vmem>>, vector<16x8xf32>
    tpu.vector_store %arg7[%c0_57, %c32], %66 {strides = array<i32>} : memref<16x40xf32, #tpu.memory_space<vmem>>, vector<16x8xf32>,
    %c0_58 = arith.constant 0 : index
    %c0_59 = arith.constant 0 : index
    %68 = vector.load %arg7[%c0_58, %c0_59] : memref<16x40xf32, #tpu.memory_space<vmem>>, vector<16x40xf32>
    %c24_60 = arith.constant 24 : index
    %c0_61 = arith.constant 0 : index
    %69 = vector.load %arg3[%c24_60, %c0_61] : memref<64x8xf32, #tpu.memory_space<vmem>>, vector<40x8xf32>
    %cst_62 = arith.constant dense<0.000000e+00> : vector<16x8xf32>
    %70 = tpu.matmul %68, %69, %cst_62 {dimension_numbers = #tpu.dot_dimension_numbers<[1], [0], [0], [1], [0, 0, 1, 1], [], []>} : vector<16x40xf32>, vector<40x8xf32>, vector<16x8xf32> -> vector<16x8xf32>
    %c1_63 = arith.constant 1 : index
    %c0_64 = arith.constant 0 : index
    %71 = vector.load %arg4[%c1_63, %c0_64] : memref<2x8xf32, #tpu.memory_space<vmem>>, vector<1x8xf32>
    %72 = vector.shape_cast %71 : vector<1x8xf32> to vector<8xf32>
    %73 = vector.shape_cast %72 : vector<8xf32> to vector<1x8xf32>
    %74 = vector.broadcast %73 : vector<1x8xf32> to vector<16x8xf32>
    %75 = arith.addf %70, %74 : vector<16x8xf32>
    %c0_65 = arith.constant 0 : index
    %c2 = arith.constant 2 : index
    %c0_66 = arith.constant 0 : index
    %c0_67 = arith.constant 0 : index
    %76 = vector.load %arg5[%c0_65, %c2, %c0_66, %c0_67] : memref<1x3x16x8xf32, #tpu.memory_space<vmem>>, vector<1x1x16x8xf32>
    %77 = vector.shape_cast %76 : vector<1x1x16x8xf32> to vector<16x8xf32>
    %78 = vector.shape_cast %75 : vector<16x8xf32> to vector<1x1x16x8xf32>
    tpu.vector_store %arg5[%c0_65, %c2, %c0_66, %c0_67], %78 {strides = array<i32>} : memref<1x3x16x8xf32, #tpu.memory_space<vmem>>, vector<1x1x16x8xf32>,
    return
  }
  func.func @transform_0(%arg0: i32, %arg1: i32) -> (i32, i32, i32) {
    %c0_i32 = arith.constant 0 : i32
    %c0_i32_0 = arith.constant 0 : i32
    %c0_i32_1 = arith.constant 0 : i32
    return %arg0, %c0_i32, %c0_i32_0 : i32, i32, i32
  }
  func.func @transform_1(%arg0: i32, %arg1: i32) -> (i32, i32) {
    %c0_i32 = arith.constant 0 : i32
    %c0_i32_0 = arith.constant 0 : i32
    %c0_i32_1 = arith.constant 0 : i32
    return %c0_i32, %c0_i32_0 : i32, i32
  }
  func.func @transform_2(%arg0: i32, %arg1: i32) -> (i32, i32) {
    %c0_i32 = arith.constant 0 : i32
    %c0_i32_0 = arith.constant 0 : i32
    %c0_i32_1 = arith.constant 0 : i32
    return %c0_i32, %c0_i32_0 : i32, i32
  }
  func.func @transform_3(%arg0: i32, %arg1: i32) -> (i32, i32, i32, i32) {
    %c0_i32 = arith.constant 0 : i32
    %c0_i32_0 = arith.constant 0 : i32
    %c0_i32_1 = arith.constant 0 : i32
    return %arg0, %c0_i32, %arg1, %c0_i32_0 : i32, i32, i32, i32
  }
}

module attributes {stable_mosaic.version = 11 : i64} {
  func.func @_fused_multiscale_kernel(%arg0: i32, %arg1: i32, %arg2: memref<1x16x8xf32, #tpu.memory_space<vmem>>, %arg3: memref<64x8xf32, #tpu.memory_space<vmem>>, %arg4: memref<2x8xf32, #tpu.memory_space<vmem>>, %arg5: memref<1x3x16x8xf32, #tpu.memory_space<vmem>>, %arg6: memref<20x8xf32, #tpu.memory_space<vmem>>, %arg7: memref<16x40xf32, #tpu.memory_space<vmem>>) attributes {dimension_semantics = [#tpu.dimension_semantics<parallel>, #tpu.dimension_semantics<arbitrary>], iteration_bounds = array<i64: 2, 1>, scalar_prefetch = 0 : i64, scratch_operands = 2 : i64, tpu.core_type = #tpu.core_type<tc>, window_params = [{transform_indices = @transform_0, window_bounds = array<i64: 1, 16, 8>}, {pipeline_mode = #tpu.pipeline_mode<synchronous>, transform_indices = @transform_1, window_bounds = array<i64: 64, 8>}, {pipeline_mode = #tpu.pipeline_mode<synchronous>, transform_indices = @transform_2, window_bounds = array<i64: 2, 8>}, {transform_indices = @transform_3, window_bounds = array<i64: 1, 3, 16, 8>}]} {
    %c16_i32 = arith.constant 16 : i32
    %0 = arith.muli %arg1, %c16_i32 : i32
    %1 = tpu.assume_multiple %0, 8 : i32
    %c0_i32 = arith.constant 0 : i32
    %2 = arith.cmpi eq, %arg1, %c0_i32 : i32
    %3 = arith.extui %2 : i1 to i32
    %c0_i32_0 = arith.constant 0 : i32
    %4 = arith.cmpi ne, %3, %c0_i32_0 : i32
    scf.if %4 {
      %c0_68 = arith.constant 0 : index
      %c0_69 = arith.constant 0 : index
      %c0_70 = arith.constant 0 : index
      %79 = vector.load %arg2[%c0_68, %c0_69, %c0_70] : memref<1x16x8xf32, #tpu.memory_space<vmem>>, vector<1x16x8xf32>
      %80 = vector.shape_cast %79 : vector<1x16x8xf32> to vector<16x8xf32>
      %c2_71 = arith.constant 2 : index
      %c0_72 = arith.constant 0 : index
      %81 = vector.load %arg6[%c2_71, %c0_72] : memref<20x8xf32, #tpu.memory_space<vmem>>, vector<16x8xf32>
      tpu.vector_store %arg6[%c2_71, %c0_72], %80 {strides = array<i32>} : memref<20x8xf32, #tpu.memory_space<vmem>>, vector<16x8xf32>,
    } else {
    }
    %c0 = arith.constant 0 : index
    %5 = arith.index_cast %1 : i32 to index
    %c0_1 = arith.constant 0 : index
    %6 = vector.load %arg2[%c0, %5, %c0_1] : memref<1x16x8xf32, #tpu.memory_space<vmem>>, vector<1x16x8xf32>
    %7 = vector.shape_cast %6 : vector<1x16x8xf32> to vector<16x8xf32>
    %c0_2 = arith.constant 0 : index
    %c0_3 = arith.constant 0 : index
    %c0_4 = arith.constant 0 : index
    %c0_5 = arith.constant 0 : index
    %8 = vector.load %arg5[%c0_2, %c0_3, %c0_4, %c0_5] : memref<1x3x16x8xf32, #tpu.memory_space<vmem>>, vector<1x1x16x8xf32>
    %9 = vector.shape_cast %8 : vector<1x1x16x8xf32> to vector<16x8xf32>
    %10 = vector.shape_cast %7 : vector<16x8xf32> to vector<1x1x16x8xf32>
    tpu.vector_store %arg5[%c0_2, %c0_3, %c0_4, %c0_5], %10 {strides = array<i32>} : memref<1x3x16x8xf32, #tpu.memory_space<vmem>>, vector<1x1x16x8xf32>,
    %c0_6 = arith.constant 0 : index
    %c0_7 = arith.constant 0 : index
    %c0_8 = arith.constant 0 : index
    %11 = vector.load %arg2[%c0_6, %c0_7, %c0_8] : memref<1x16x8xf32, #tpu.memory_space<vmem>>, vector<1x1x8xf32>
    %12 = vector.shape_cast %11 : vector<1x1x8xf32> to vector<1x8xf32>
    %c1 = arith.constant 1 : index
    %c0_9 = arith.constant 0 : index
    %13 = vector.load %arg6[%c1, %c0_9] : memref<20x8xf32, #tpu.memory_space<vmem>>, vector<1x8xf32>
    tpu.vector_store %arg6[%c1, %c0_9], %12 {strides = array<i32>} : memref<20x8xf32, #tpu.memory_space<vmem>>, vector<1x8xf32>,
    %c0_10 = arith.constant 0 : index
    %c15 = arith.constant 15 : index
    %c0_11 = arith.constant 0 : index
    %14 = vector.load %arg2[%c0_10, %c15, %c0_11] : memref<1x16x8xf32, #tpu.memory_space<vmem>>, vector<1x1x8xf32>
    %15 = vector.shape_cast %14 : vector<1x1x8xf32> to vector<1x8xf32>
    %c18 = arith.constant 18 : index
    %c0_12 = arith.constant 0 : index
    %16 = vector.load %arg6[%c18, %c0_12] : memref<20x8xf32, #tpu.memory_space<vmem>>, vector<1x8xf32>
    tpu.vector_store %arg6[%c18, %c0_12], %15 {strides = array<i32>} : memref<20x8xf32, #tpu.memory_space<vmem>>, vector<1x8xf32>,
    %c1_i32 = arith.constant 1 : i32
    %17 = arith.addi %1, %c1_i32 : i32
    %c0_i32_13 = arith.constant 0 : i32
    %18 = arith.addi %17, %c0_i32_13 : i32
    %19 = arith.index_cast %18 : i32 to index
    %c0_14 = arith.constant 0 : index
    %20 = vector.load %arg6[%19, %c0_14] : memref<20x8xf32, #tpu.memory_space<vmem>>, vector<16x8xf32>
    %c0_15 = arith.constant 0 : index
    %c0_16 = arith.constant 0 : index
    %21 = vector.load %arg7[%c0_15, %c0_16] : memref<16x40xf32, #tpu.memory_space<vmem>>, vector<16x8xf32>
    tpu.vector_store %arg7[%c0_15, %c0_16], %20 {strides = array<i32>} : memref<16x40xf32, #tpu.memory_space<vmem>>, vector<16x8xf32>,
    %c1_i32_17 = arith.constant 1 : i32
    %22 = arith.addi %17, %c1_i32_17 : i32
    %23 = arith.index_cast %22 : i32 to index
    %c0_18 = arith.constant 0 : index
    %24 = vector.load %arg6[%23, %c0_18] : memref<20x8xf32, #tpu.memory_space<vmem>>, vector<16x8xf32>
    %c0_19 = arith.constant 0 : index
    %c8 = arith.constant 8 : index
    %25 = vector.load %arg7[%c0_19, %c8] : memref<16x40xf32, #tpu.memory_space<vmem>>, vector<16x8xf32>
    tpu.vector_store %arg7[%c0_19, %c8], %24 {strides = array<i32>} : memref<16x40xf32, #tpu.memory_space<vmem>>, vector<16x8xf32>,
    %c2_i32 = arith.constant 2 : i32
    %26 = arith.addi %17, %c2_i32 : i32
    %27 = arith.index_cast %26 : i32 to index
    %c0_20 = arith.constant 0 : index
    %28 = vector.load %arg6[%27, %c0_20] : memref<20x8xf32, #tpu.memory_space<vmem>>, vector<16x8xf32>
    %c0_21 = arith.constant 0 : index
    %c16 = arith.constant 16 : index
    %29 = vector.load %arg7[%c0_21, %c16] : memref<16x40xf32, #tpu.memory_space<vmem>>, vector<16x8xf32>
    tpu.vector_store %arg7[%c0_21, %c16], %28 {strides = array<i32>} : memref<16x40xf32, #tpu.memory_space<vmem>>, vector<16x8xf32>,
    %c0_22 = arith.constant 0 : index
    %c0_23 = arith.constant 0 : index
    %30 = vector.load %arg7[%c0_22, %c0_23] : memref<16x40xf32, #tpu.memory_space<vmem>>, vector<16x24xf32>
    %c0_24 = arith.constant 0 : index
    %c0_25 = arith.constant 0 : index
    %31 = vector.load %arg3[%c0_24, %c0_25] : memref<64x8xf32, #tpu.memory_space<vmem>>, vector<24x8xf32>
    %cst = arith.constant dense<0.000000e+00> : vector<16x8xf32>
    %32 = tpu.matmul %30, %31, %cst {dimension_numbers = #tpu.dot_dimension_numbers<[1], [0], [0], [1], [0, 0, 1, 1], [], []>} : vector<16x24xf32>, vector<24x8xf32>, vector<16x8xf32> -> vector<16x8xf32>
    %c0_26 = arith.constant 0 : index
    %c0_27 = arith.constant 0 : index
    %33 = vector.load %arg4[%c0_26, %c0_27] : memref<2x8xf32, #tpu.memory_space<vmem>>, vector<1x8xf32>
    %34 = vector.shape_cast %33 : vector<1x8xf32> to vector<8xf32>
    %35 = vector.shape_cast %34 : vector<8xf32> to vector<1x8xf32>
    %36 = vector.broadcast %35 : vector<1x8xf32> to vector<16x8xf32>
    %37 = arith.addf %32, %36 : vector<16x8xf32>
    %c0_28 = arith.constant 0 : index
    %c1_29 = arith.constant 1 : index
    %c0_30 = arith.constant 0 : index
    %c0_31 = arith.constant 0 : index
    %38 = vector.load %arg5[%c0_28, %c1_29, %c0_30, %c0_31] : memref<1x3x16x8xf32, #tpu.memory_space<vmem>>, vector<1x1x16x8xf32>
    %39 = vector.shape_cast %38 : vector<1x1x16x8xf32> to vector<16x8xf32>
    %40 = vector.shape_cast %37 : vector<16x8xf32> to vector<1x1x16x8xf32>
    tpu.vector_store %arg5[%c0_28, %c1_29, %c0_30, %c0_31], %40 {strides = array<i32>} : memref<1x3x16x8xf32, #tpu.memory_space<vmem>>, vector<1x1x16x8xf32>,
    %c0_32 = arith.constant 0 : index
    %c0_33 = arith.constant 0 : index
    %c0_34 = arith.constant 0 : index
    %41 = vector.load %arg2[%c0_32, %c0_33, %c0_34] : memref<1x16x8xf32, #tpu.memory_space<vmem>>, vector<1x2x8xf32>
    %42 = vector.shape_cast %41 : vector<1x2x8xf32> to vector<2x8xf32>
    %c0_35 = arith.constant 0 : index
    %c0_36 = arith.constant 0 : index
    %43 = vector.load %arg6[%c0_35, %c0_36] : memref<20x8xf32, #tpu.memory_space<vmem>>, vector<2x8xf32>
    tpu.vector_store %arg6[%c0_35, %c0_36], %42 {strides = array<i32>} : memref<20x8xf32, #tpu.memory_space<vmem>>, vector<2x8xf32>,
    %c0_37 = arith.constant 0 : index
    %c14 = arith.constant 14 : index
    %c0_38 = arith.constant 0 : index
    %44 = vector.load %arg2[%c0_37, %c14, %c0_38] : memref<1x16x8xf32, #tpu.memory_space<vmem>>, vector<1x2x8xf32>
    %45 = vector.shape_cast %44 : vector<1x2x8xf32> to vector<2x8xf32>
    %c18_39 = arith.constant 18 : index
    %c0_40 = arith.constant 0 : index
    %46 = vector.load %arg6[%c18_39, %c0_40] : memref<20x8xf32, #tpu.memory_space<vmem>>, vector<2x8xf32>
    tpu.vector_store %arg6[%c18_39, %c0_40], %45 {strides = array<i32>} : memref<20x8xf32, #tpu.memory_space<vmem>>, vector<2x8xf32>,
    %c0_i32_41 = arith.constant 0 : i32
    %47 = arith.addi %1, %c0_i32_41 : i32
    %c0_i32_42 = arith.constant 0 : i32
    %48 = arith.addi %47, %c0_i32_42 : i32
    %49 = arith.index_cast %48 : i32 to index
    %c0_43 = arith.constant 0 : index
    %50 = vector.load %arg6[%49, %c0_43] : memref<20x8xf32, #tpu.memory_space<vmem>>, vector<16x8xf32>
    %c0_44 = arith.constant 0 : index
    %c0_45 = arith.constant 0 : index
    %51 = vector.load %arg7[%c0_44, %c0_45] : memref<16x40xf32, #tpu.memory_space<vmem>>, vector<16x8xf32>
    tpu.vector_store %arg7[%c0_44, %c0_45], %50 {strides = array<i32>} : memref<16x40xf32, #tpu.memory_space<vmem>>, vector<16x8xf32>,
    %c1_i32_46 = arith.constant 1 : i32
    %52 = arith.addi %47, %c1_i32_46 : i32
    %53 = arith.index_cast %52 : i32 to index
    %c0_47 = arith.constant 0 : index
    %54 = vector.load %arg6[%53, %c0_47] : memref<20x8xf32, #tpu.memory_space<vmem>>, vector<16x8xf32>
    %c0_48 = arith.constant 0 : index
    %c8_49 = arith.constant 8 : index
    %55 = vector.load %arg7[%c0_48, %c8_49] : memref<16x40xf32, #tpu.memory_space<vmem>>, vector<16x8xf32>
    tpu.vector_store %arg7[%c0_48, %c8_49], %54 {strides = array<i32>} : memref<16x40xf32, #tpu.memory_space<vmem>>, vector<16x8xf32>,
    %c2_i32_50 = arith.constant 2 : i32
    %56 = arith.addi %47, %c2_i32_50 : i32
    %57 = arith.index_cast %56 : i32 to index
    %c0_51 = arith.constant 0 : index
    %58 = vector.load %arg6[%57, %c0_51] : memref<20x8xf32, #tpu.memory_space<vmem>>, vector<16x8xf32>
    %c0_52 = arith.constant 0 : index
    %c16_53 = arith.constant 16 : index
    %59 = vector.load %arg7[%c0_52, %c16_53] : memref<16x40xf32, #tpu.memory_space<vmem>>, vector<16x8xf32>
    tpu.vector_store %arg7[%c0_52, %c16_53], %58 {strides = array<i32>} : memref<16x40xf32, #tpu.memory_space<vmem>>, vector<16x8xf32>,
    %c3_i32 = arith.constant 3 : i32
    %60 = arith.addi %47, %c3_i32 : i32
    %61 = arith.index_cast %60 : i32 to index
    %c0_54 = arith.constant 0 : index
    %62 = vector.load %arg6[%61, %c0_54] : memref<20x8xf32, #tpu.memory_space<vmem>>, vector<16x8xf32>
    %c0_55 = arith.constant 0 : index
    %c24 = arith.constant 24 : index
    %63 = vector.load %arg7[%c0_55, %c24] : memref<16x40xf32, #tpu.memory_space<vmem>>, vector<16x8xf32>
    tpu.vector_store %arg7[%c0_55, %c24], %62 {strides = array<i32>} : memref<16x40xf32, #tpu.memory_space<vmem>>, vector<16x8xf32>,
    %c4_i32 = arith.constant 4 : i32
    %64 = arith.addi %47, %c4_i32 : i32
    %65 = arith.index_cast %64 : i32 to index
    %c0_56 = arith.constant 0 : index
    %66 = vector.load %arg6[%65, %c0_56] : memref<20x8xf32, #tpu.memory_space<vmem>>, vector<16x8xf32>
    %c0_57 = arith.constant 0 : index
    %c32 = arith.constant 32 : index
    %67 = vector.load %arg7[%c0_57, %c32] : memref<16x40xf32, #tpu.memory_space<vmem>>, vector<16x8xf32>
    tpu.vector_store %arg7[%c0_57, %c32], %66 {strides = array<i32>} : memref<16x40xf32, #tpu.memory_space<vmem>>, vector<16x8xf32>,
    %c0_58 = arith.constant 0 : index
    %c0_59 = arith.constant 0 : index
    %68 = vector.load %arg7[%c0_58, %c0_59] : memref<16x40xf32, #tpu.memory_space<vmem>>, vector<16x40xf32>
    %c24_60 = arith.constant 24 : index
    %c0_61 = arith.constant 0 : index
    %69 = vector.load %arg3[%c24_60, %c0_61] : memref<64x8xf32, #tpu.memory_space<vmem>>, vector<40x8xf32>
    %cst_62 = arith.constant dense<0.000000e+00> : vector<16x8xf32>
    %70 = tpu.matmul %68, %69, %cst_62 {dimension_numbers = #tpu.dot_dimension_numbers<[1], [0], [0], [1], [0, 0, 1, 1], [], []>} : vector<16x40xf32>, vector<40x8xf32>, vector<16x8xf32> -> vector<16x8xf32>
    %c1_63 = arith.constant 1 : index
    %c0_64 = arith.constant 0 : index
    %71 = vector.load %arg4[%c1_63, %c0_64] : memref<2x8xf32, #tpu.memory_space<vmem>>, vector<1x8xf32>
    %72 = vector.shape_cast %71 : vector<1x8xf32> to vector<8xf32>
    %73 = vector.shape_cast %72 : vector<8xf32> to vector<1x8xf32>
    %74 = vector.broadcast %73 : vector<1x8xf32> to vector<16x8xf32>
    %75 = arith.addf %70, %74 : vector<16x8xf32>
    %c0_65 = arith.constant 0 : index
    %c2 = arith.constant 2 : index
    %c0_66 = arith.constant 0 : index
    %c0_67 = arith.constant 0 : index
    %76 = vector.load %arg5[%c0_65, %c2, %c0_66, %c0_67] : memref<1x3x16x8xf32, #tpu.memory_space<vmem>>, vector<1x1x16x8xf32>
    %77 = vector.shape_cast %76 : vector<1x1x16x8xf32> to vector<16x8xf32>
    %78 = vector.shape_cast %75 : vector<16x8xf32> to vector<1x1x16x8xf32>
    tpu.vector_store %arg5[%c0_65, %c2, %c0_66, %c0_67], %78 {strides = array<i32>} : memref<1x3x16x8xf32, #tpu.memory_space<vmem>>, vector<1x1x16x8xf32>,
    return
  }
  func.func @transform_0(%arg0: i32, %arg1: i32) -> (i32, i32, i32) {
    %c0_i32 = arith.constant 0 : i32
    %c0_i32_0 = arith.constant 0 : i32
    %c0_i32_1 = arith.constant 0 : i32
    return %arg0, %c0_i32, %c0_i32_0 : i32, i32, i32
  }
  func.func @transform_1(%arg0: i32, %arg1: i32) -> (i32, i32) {
    %c0_i32 = arith.constant 0 : i32
    %c0_i32_0 = arith.constant 0 : i32
    %c0_i32_1 = arith.constant 0 : i32
    return %c0_i32, %c0_i32_0 : i32, i32
  }
  func.func @transform_2(%arg0: i32, %arg1: i32) -> (i32, i32) {
    %c0_i32 = arith.constant 0 : i32
    %c0_i32_0 = arith.constant 0 : i32
    %c0_i32_1 = arith.constant 0 : i32
    return %c0_i32, %c0_i32_0 : i32, i32
  }
  func.func @transform_3(%arg0: i32, %arg1: i32) -> (i32, i32, i32, i32) {
    %c0_i32 = arith.constant 0 : i32
    %c0_i32_0 = arith.constant 0 : i32
    %c0_i32_1 = arith.constant 0 : i32
    return %arg0, %c0_i32, %arg1, %c0_i32_0 : i32, i32, i32, i32
  }
}

</mosaic_0001>

<bundles_post_ra>
// kernel: multi_scale_conv_extractor.1
= control target key start
LH: loop header
LB: loop body
LE: loop exit
PB: predicated region body
PF: predicated region fallthrough
CT: control target
= control target key end

     0   :  { %s760_s12 = smov 0   ;;  %s762_s13 = smov 0   ;;  %s859_s0 = inlined_call_operand.vmem [shape: f32[2,16,8], index: 0, kind: input, shape index: {}]   ;;  %s860_s1 = inlined_call_operand.vmem [shape: f32[64,8], index: 1, kind: input, shape index: {}]   ;;  %s861_s2 = inlined_call_operand.vmem [shape: f32[2,8], index: 2, kind: input, shape index: {}]   ;;  %s862_s3 = inlined_call_operand.vmem [shape: f32[2,3,16,8], index: 3, kind: output, shape index: {}]  }
   0x1   :  { %s764_s14 = smov 0  }
   0x2 LB: > { %s25_s15 = sadd.s32 1, %s730_s13  ;;  %p606_p0 = scmp.ge.s32.totalorder %s734_s14, 1  ;;  %s734_s14 = sphi %s764_s14, %s13_s14   ;;  %s730_s13 = sphi %s762_s13, %s864_s13   ;;  %s726_s12 = sphi %s760_s12, %s863_s12  }
   0x3   : > { %p27_p1 = scmp.ge.s32.totalorder %s25_s15, 2  ;;  %p151_p2 = scmp.lt.s32.totalorder %s734_s14, 3 }
   0x5   : > { %s866_s15 = smov (%p27_p1, %s25_s15), 0  ;;  %p152_p3 = pnand %p606_p0, %p151_p2 }
   0x6   : > { %p179_p4 = scmp.lt.s32.totalorder (!%p152_p3), %s726_s12, 1  ;;  %vm201_vm0 = vcmask (!%p152_p3), 64512   ;;  %vm211_vm1 = vcmask (!%p152_p3), 57344   ;;  %v253_v4 = vld [vmem:[%s860_s1] sm:$0xff] (!%p152_p3)  ;;  %v254_v5 = vld [vmem:[%s860_s1 + $0x8] sm:$0xff] (!%p152_p3)  ;;  %v255_v7 = vld [vmem:[%s860_s1 + $0x10] sm:$0xff] (!%p152_p3) }
   0x7   : > { %155 = sbr.rel (%p152_p3) target bundleno = 386 (0x182), region = 32  ;;  %v671_v6 = vpack.c.bf16 (!%p152_p3), %v254_v5, %v253_v4  ;;  %vm347_vm2 = vcmask (!%p152_p3), 58368   ;;  %s736_s26 = smov (!%p152_p3), 8   ;;  %v410_v16 = vld [vmem:[%s860_s1 + $0x18] sm:$0xff] (!%p152_p3)  ;;  %v411_v17 = vld [vmem:[%s860_s1 + $0x20] sm:$0xff] (!%p152_p3)  ;;  %v412_v19 = vld [vmem:[%s860_s1 + $0x28] sm:$0xff] (!%p152_p3) }
   0x8   : > { %s737_s27 = smov (!%p152_p3), 16   ;;  %v675_v18 = vpack.c.bf16 (!%p152_p3), %v411_v17, %v410_v16  ;;  %v413_v20 = vld [vmem:[%s860_s1 + $0x30] sm:$0xff] (!%p152_p3)  ;;  %v414_v22 = vld [vmem:[%s860_s1 + $0x38] sm:$0xff] (!%p152_p3)  ;;  %s738_s11 = smov (!%p152_p3), 24   ;;  %vm233_vm3 = vcmask (!%p152_p3), 130112   ;;  %vm248_vm4 = vcmask (!%p152_p3), 195712  }
   0x9   : > { %672 = vmatprep.subr.bf16.mxu0 (!%p152_p3), %v671_v6  ;;  %v679_v21 = vpack.c.bf16 (!%p152_p3), %v413_v20, %v412_v19  ;;  %s739_s20 = smov (!%p152_p3), 32   ;;  %vm261_vm5 = vcmask (!%p152_p3), 195584   ;;  %vm390_vm6 = vcmask (!%p152_p3), 261312   ;;  %vm405_vm7 = vcmask (!%p152_p3), 326912   ;;  %v616_v45 = vld [vmem:[%s861_s2] ss:$0 sm:$0xff] (!%p152_p3) }
   0xa   : > { %674 = vmatpush3.bf16.msra.mxu0 (!%p152_p3), %v671_v6  ;;  %676 = vmatprep.subr.bf16.mxu1 (!%p152_p3), %v675_v18  ;;  %vm420_vm8 = vcmask (!%p152_p3), 326656   ;;  %v629_v50 = vld [vmem:[%s861_s2 + $0x1] ss:$0 sm:$0xff] (!%p152_p3) }
   0xb   : > { %653 = vmatprep.subr.mxu0 (!%p152_p3), %v255_v7  ;;  %678 = vmatpush3.bf16.msra.mxu1 (!%p152_p3), %v675_v18 }
   0xc   : > { %680 = vmatprep.subr.bf16.mxu1 (!%p152_p3), %v679_v21 }
   0xe   : > { %s868_s12 = smov (!%p179_p4, %s726_s12), 1  ;;  %654 = vmatpush3.msra.mxu0 %v255_v7 }
   0xf   : > { %s636_s16 = sshll.u32 %s868_s12, 4  ;;  %682 = vmatpush3.bf16.msra.mxu1 %v679_v21 }
  0x10   : > { %s183_s19 = scalar_lea.vmem %s859_s0, %s636_s16  ;;  %666 = vmatprep.subr.mxu1 %v414_v22  ;;  %s683_s16 = smul.u32 48, %s868_s12 }
  0x11   : > { %v199_v0 = vld [vmem:[%s183_s19] sm:$0xff]  ;;  %v200_v1 = vld [vmem:[%s183_s19 + $0x8] sm:$0xff] }
  0x12   : > { %v210_v2 = vld [vmem:[%s183_s19] sm:$0x1]  ;;  %202 = vst.msk [vmem:[#allocation2 + $0x2] sm:$0xff] %vm201_vm0, %v199_v0  ;;  %203 = vst.msk [vmem:[#allocation2 + $0xa] sm:$0xff] %vm201_vm0, %v200_v1  ;;  %v213_v3 = vld [vmem:[%s183_s19 + $0xf] sm:$0x1] }
  0x13   : > { %212 = vst.msk [vmem:[#allocation2 + $0x1] sm:$0x1] %vm211_vm1, %v210_v2  ;;  %214 = vst.msk [vmem:[#allocation2 + $0x12] sm:$0x1] %vm211_vm1, %v213_v3  ;;  %v346_v8 = vld [vmem:[%s183_s19] sm:$0x3]  ;;  %667 = vmatpush3.msra.mxu1 %v414_v22 }
  0x14   : > { %v349_v9 = vld [vmem:[%s183_s19 + $0xe] sm:$0x3]  ;;  %s820_s19 = scalar_lea.vmem %s862_s3, %s683_s16 }
  0x15   : > { %208 = vst.msk [vmem:[%s820_s19] sm:$0xff] %vm201_vm0, %v199_v0  ;;  %209 = vst.msk [vmem:[%s820_s19 + $0x8] sm:$0xff] %vm201_vm0, %v200_v1 }
  0x19   : > { %v612_v10 = vld [vmem:[#allocation2 + $0x2] sm:$0xff]  ;;  %v613_v15 = vld [vmem:[#allocation2 + $0xa] sm:$0xff] }
  0x1a   : > { %v614_v11 = vld [vmem:[#allocation2 + $0x3] sm:$0xff]  ;;  %227 = vrot.lane.b32.xlu0 %v612_v10, %s736_s26  ;;  %v615_v12 = vld [vmem:[#allocation2 + $0xb] sm:$0xff] }
  0x1b   : > { %242 = vrot.lane.b32.xlu1 %v614_v11, %s737_s27  ;;  %v610_v13 = vld [vmem:[#allocation2 + $0x1] sm:$0xff]  ;;  %v622_v14 = vld [vmem:[#allocation2 + $0x9] sm:$0xff]  ;;  %350 = vst.msk [vmem:[#allocation2 + $0x12] sm:$0x3] %vm347_vm2, %v349_v9 }
  0x1c   : > { %348 = vst.msk [vmem:[#allocation2] sm:$0x3] %vm347_vm2, %v346_v8  ;;  %v627_v25 = vld [vmem:[#allocation2 + $0x4] sm:$0xff] }
  0x1d   : > { %219 = vst.msk [vmem:[#allocation3] sm:$0xff] %vm201_vm0, %v610_v13  ;;  %220 = vst.msk [vmem:[#allocation3 + $0x8] sm:$0xff] %vm201_vm0, %v622_v14  ;;  %v353_v35 = vld [vmem:[#allocation2 + $0x8] sm:$0xff] }
  0x1e   : > { %229 = vrot.lane.b32.xlu0 %v613_v15, %s736_s26 }
  0x1f   : > { %244 = vrot.lane.b32.xlu1 %v615_v12, %s737_s27 }
  0x22   : > { %372 = vrot.lane.b32.xlu0 %v612_v10, %s737_s27  ;;  %v626_v24 = vld [vmem:[#allocation2 + $0xb] sm:$0xff] }
  0x23   : > { %362 = vrot.lane.b32.xlu1 %v622_v14, %s736_s26  ;;  %v621_v23 = vld [vmem:[#allocation2 + $0x1] sm:$0xff]  ;;  %v628_v26 = vld [vmem:[#allocation2 + $0xc] sm:$0xff] }
  0x24   : > { %v352_v31 = vld [vmem:[#allocation2] sm:$0xff] }
  0x26   : > { %384 = vrot.lane.b32.xlu0 %v614_v11, %s738_s11 }
  0x27   : > { %374 = vrot.lane.b32.xlu1 %v613_v15, %s737_s27 }
  0x2a   : > { %360 = vrot.lane.b32.xlu0 %v621_v23, %s736_s26 }
  0x2b   : > { %386 = vrot.lane.b32.xlu1 %v626_v24, %s738_s11 }
  0x2e   : > { %399 = vrot.lane.b32.xlu0 %v627_v25, %s739_s20 }
  0x2f   : > { %401 = vrot.lane.b32.xlu1 %v628_v26, %s739_s20 }
  0x8c   : > { %v228_v27 = vpop.permute.xlu0 %227 }
  0x8d   : > { %v243_v28 = vpop.permute.xlu1 %242  ;;  %234 = vst.msk [vmem:[#allocation3] sm:$0xff] %vm233_vm3, %v228_v27 }
  0x8e   : > { %249 = vst.msk [vmem:[#allocation3] sm:$0xff] %vm248_vm4, %v243_v28 }
  0x90   : > { %v230_v29 = vpop.permute.xlu0 %229 }
  0x91   : > { %v245_v30 = vpop.permute.xlu1 %244  ;;  %235 = vst.msk [vmem:[#allocation3 + $0x8] sm:$0xff] %vm233_vm3, %v230_v29 }
  0x92   : > { %250 = vst.msk [vmem:[#allocation3 + $0x8] sm:$0xff] %vm248_vm4, %v245_v30 }
  0x94   : > { %v373_v32 = vpop.permute.xlu0 %372 }
  0x95   : > { %v363_v33 = vpop.permute.xlu1 %362  ;;  %v251_v34 = vld [vmem:[#allocation3] sm:$0xff] }
  0x96   : > { %655 = vmatprep.mubr.msk.f32.mxu0 %vm261_vm5, %v251_v34  ;;  %354 = vst.msk [vmem:[#allocation3] sm:$0xff] %vm201_vm0, %v352_v31 }
  0x98   : > { %v385_v36 = vpop.permute.xlu0 %384 }
  0x99   : > { %v375_v37 = vpop.permute.xlu1 %374  ;;  %v252_v38 = vld [vmem:[#allocation3 + $0x8] sm:$0xff] }
  0x9a   : > { %355 = vst.msk [vmem:[#allocation3 + $0x8] sm:$0xff] %vm201_vm0, %v353_v35  ;;  %656 = vmatmul.mubr.msk.f32.vlgmr.msra.gmra.mrb[0].mxu0 %vm261_vm5, %v252_v38 }
  0x9b   : > { %367 = vst.msk [vmem:[#allocation3 + $0x8] sm:$0xff] %vm233_vm3, %v363_v33 }
  0x9c   : > { %379 = vst.msk [vmem:[#allocation3 + $0x8] sm:$0xff] %vm248_vm4, %v375_v37  ;;  %v361_v39 = vpop.permute.xlu0 %360 }
  0x9d   : > { %v387_v40 = vpop.permute.xlu1 %386  ;;  %366 = vst.msk [vmem:[#allocation3] sm:$0xff] %vm233_vm3, %v361_v39 }
  0x9e   : > { %392 = vst.msk [vmem:[#allocation3 + $0x8] sm:$0xff] %vm390_vm6, %v387_v40 }
  0x9f   : > { %378 = vst.msk [vmem:[#allocation3] sm:$0xff] %vm248_vm4, %v373_v32 }
  0xa0   : > { %391 = vst.msk [vmem:[#allocation3] sm:$0xff] %vm390_vm6, %v385_v36  ;;  %v400_v41 = vpop.permute.xlu0 %399 }
  0xa1   : > { %v402_v42 = vpop.permute.xlu1 %401  ;;  %406 = vst.msk [vmem:[#allocation3] sm:$0xff] %vm405_vm7, %v400_v41 }
  0xa2   : > { %407 = vst.msk [vmem:[#allocation3 + $0x8] sm:$0xff] %vm405_vm7, %v402_v42 }
  0xa8   : > { %v408_v43 = vld [vmem:[#allocation3] sm:$0xff] }
  0xa9   : > { %v409_v44 = vld [vmem:[#allocation3 + $0x8] sm:$0xff]  ;;  %668 = vmatprep.mubr.msk.f32.mxu1 %vm420_vm8, %v408_v43 }
  0xaa   : > { %669 = vmatmul.mubr.msk.f32.vlgmr.msra.gmra.mrb[0].mxu1 %vm420_vm8, %v409_v44 }
 0x16d   : > { %v657_v46 = vpop.f32.mrb[0].mxu0 }
 0x16e   : > { %v340_v47 = vadd.f32 %v657_v46, %v616_v45  ;;  %v334_v48 = vpop.f32.mrb[1].mxu0 }
 0x16f   : > { %v335_v49 = vadd.f32 %v616_v45, %v334_v48 }
 0x170   : > { %620 = vst.msk [vmem:[%s820_s19 + $0x18] sm:$0xff] %vm201_vm0, %v340_v47 }
 0x171   : > { %619 = vst.msk [vmem:[%s820_s19 + $0x10] sm:$0xff] %vm201_vm0, %v335_v49 }
 0x17d   : > { %v670_v51 = vpop.f32.mrb[0].mxu1 }
 0x17e   : > { %v499_v52 = vadd.f32 %v670_v51, %v629_v50  ;;  %v493_v53 = vpop.f32.mrb[1].mxu1 }
 0x17f   : > { %v494_v54 = vadd.f32 %v629_v50, %v493_v53 }
 0x180   : > { %633 = vst.msk [vmem:[%s820_s19 + $0x28] sm:$0xff] %vm201_vm0, %v499_v52 }
 0x181   : > { %632 = vst.msk [vmem:[%s820_s19 + $0x20] sm:$0xff] %vm201_vm0, %v494_v54 }
 0x182 PF: > { %s13_s14 = sadd.s32 1, %s734_s14   ;;  %s863_s12 = smov %s730_s13 }
 0x183   : > { %p10_p5 = scmp.ge.s32.totalorder %s13_s14, 4   ;;  %s864_s13 = smov %s866_s15 }
 0x185   :  { %12 = sbr.rel (!%p10_p5) target bundleno = 2 (0x2), region = 74 }

// kernel: multi_scale_conv_extractor.1
= control target key start
LH: loop header
LB: loop body
LE: loop exit
PB: predicated region body
PF: predicated region fallthrough
CT: control target
= control target key end

     0   :  { %s760_s12 = smov 0   ;;  %s762_s13 = smov 0   ;;  %s859_s0 = inlined_call_operand.vmem [shape: f32[2,16,8], index: 0, kind: input, shape index: {}]   ;;  %s860_s1 = inlined_call_operand.vmem [shape: f32[64,8], index: 1, kind: input, shape index: {}]   ;;  %s861_s2 = inlined_call_operand.vmem [shape: f32[2,8], index: 2, kind: input, shape index: {}]   ;;  %s862_s3 = inlined_call_operand.vmem [shape: f32[2,3,16,8], index: 3, kind: output, shape index: {}]  }
   0x1   :  { %s764_s14 = smov 0  }
   0x2 LB: > { %s25_s15 = sadd.s32 1, %s730_s13  ;;  %p606_p0 = scmp.ge.s32.totalorder %s734_s14, 1  ;;  %s734_s14 = sphi %s764_s14, %s13_s14   ;;  %s730_s13 = sphi %s762_s13, %s864_s13   ;;  %s726_s12 = sphi %s760_s12, %s863_s12  }
   0x3   : > { %p27_p1 = scmp.ge.s32.totalorder %s25_s15, 2  ;;  %p151_p2 = scmp.lt.s32.totalorder %s734_s14, 3 }
   0x5   : > { %s866_s15 = smov (%p27_p1, %s25_s15), 0  ;;  %p152_p3 = pnand %p606_p0, %p151_p2 }
   0x6   : > { %p179_p4 = scmp.lt.s32.totalorder (!%p152_p3), %s726_s12, 1  ;;  %vm201_vm0 = vcmask (!%p152_p3), 64512   ;;  %vm211_vm1 = vcmask (!%p152_p3), 57344   ;;  %v253_v4 = vld [vmem:[%s860_s1] sm:$0xff] (!%p152_p3)  ;;  %v254_v5 = vld [vmem:[%s860_s1 + $0x8] sm:$0xff] (!%p152_p3)  ;;  %v255_v7 = vld [vmem:[%s860_s1 + $0x10] sm:$0xff] (!%p152_p3) }
   0x7   : > { %155 = sbr.rel (%p152_p3) target bundleno = 386 (0x182), region = 32  ;;  %v671_v6 = vpack.c.bf16 (!%p152_p3), %v254_v5, %v253_v4  ;;  %vm347_vm2 = vcmask (!%p152_p3), 58368   ;;  %s736_s26 = smov (!%p152_p3), 8   ;;  %v410_v16 = vld [vmem:[%s860_s1 + $0x18] sm:$0xff] (!%p152_p3)  ;;  %v411_v17 = vld [vmem:[%s860_s1 + $0x20] sm:$0xff] (!%p152_p3)  ;;  %v412_v19 = vld [vmem:[%s860_s1 + $0x28] sm:$0xff] (!%p152_p3) }
   0x8   : > { %s737_s27 = smov (!%p152_p3), 16   ;;  %v675_v18 = vpack.c.bf16 (!%p152_p3), %v411_v17, %v410_v16  ;;  %v413_v20 = vld [vmem:[%s860_s1 + $0x30] sm:$0xff] (!%p152_p3)  ;;  %v414_v22 = vld [vmem:[%s860_s1 + $0x38] sm:$0xff] (!%p152_p3)  ;;  %s738_s11 = smov (!%p152_p3), 24   ;;  %vm233_vm3 = vcmask (!%p152_p3), 130112   ;;  %vm248_vm4 = vcmask (!%p152_p3), 195712  }
   0x9   : > { %672 = vmatprep.subr.bf16.mxu0 (!%p152_p3), %v671_v6  ;;  %v679_v21 = vpack.c.bf16 (!%p152_p3), %v413_v20, %v412_v19  ;;  %s739_s20 = smov (!%p152_p3), 32   ;;  %vm261_vm5 = vcmask (!%p152_p3), 195584   ;;  %vm390_vm6 = vcmask (!%p152_p3), 261312   ;;  %vm405_vm7 = vcmask (!%p152_p3), 326912   ;;  %v616_v45 = vld [vmem:[%s861_s2] ss:$0 sm:$0xff] (!%p152_p3) }
   0xa   : > { %674 = vmatpush3.bf16.msra.mxu0 (!%p152_p3), %v671_v6  ;;  %676 = vmatprep.subr.bf16.mxu1 (!%p152_p3), %v675_v18  ;;  %vm420_vm8 = vcmask (!%p152_p3), 326656   ;;  %v629_v50 = vld [vmem:[%s861_s2 + $0x1] ss:$0 sm:$0xff] (!%p152_p3) }
   0xb   : > { %653 = vmatprep.subr.mxu0 (!%p152_p3), %v255_v7  ;;  %678 = vmatpush3.bf16.msra.mxu1 (!%p152_p3), %v675_v18 }
   0xc   : > { %680 = vmatprep.subr.bf16.mxu1 (!%p152_p3), %v679_v21 }
   0xe   : > { %s868_s12 = smov (!%p179_p4, %s726_s12), 1  ;;  %654 = vmatpush3.msra.mxu0 %v255_v7 }
   0xf   : > { %s636_s16 = sshll.u32 %s868_s12, 4  ;;  %682 = vmatpush3.bf16.msra.mxu1 %v679_v21 }
  0x10   : > { %s183_s19 = scalar_lea.vmem %s859_s0, %s636_s16  ;;  %666 = vmatprep.subr.mxu1 %v414_v22  ;;  %s683_s16 = smul.u32 48, %s868_s12 }
  0x11   : > { %v199_v0 = vld [vmem:[%s183_s19] sm:$0xff]  ;;  %v200_v1 = vld [vmem:[%s183_s19 + $0x8] sm:$0xff] }
  0x12   : > { %v210_v2 = vld [vmem:[%s183_s19] sm:$0x1]  ;;  %202 = vst.msk [vmem:[#allocation2 + $0x2] sm:$0xff] %vm201_vm0, %v199_v0  ;;  %203 = vst.msk [vmem:[#allocation2 + $0xa] sm:$0xff] %vm201_vm0, %v200_v1  ;;  %v213_v3 = vld [vmem:[%s183_s19 + $0xf] sm:$0x1] }
  0x13   : > { %212 = vst.msk [vmem:[#allocation2 + $0x1] sm:$0x1] %vm211_vm1, %v210_v2  ;;  %214 = vst.msk [vmem:[#allocation2 + $0x12] sm:$0x1] %vm211_vm1, %v213_v3  ;;  %v346_v8 = vld [vmem:[%s183_s19] sm:$0x3]  ;;  %667 = vmatpush3.msra.mxu1 %v414_v22 }
  0x14   : > { %v349_v9 = vld [vmem:[%s183_s19 + $0xe] sm:$0x3]  ;;  %s820_s19 = scalar_lea.vmem %s862_s3, %s683_s16 }
  0x15   : > { %208 = vst.msk [vmem:[%s820_s19] sm:$0xff] %vm201_vm0, %v199_v0  ;;  %209 = vst.msk [vmem:[%s820_s19 + $0x8] sm:$0xff] %vm201_vm0, %v200_v1 }
  0x19   : > { %v612_v10 = vld [vmem:[#allocation2 + $0x2] sm:$0xff]  ;;  %v613_v15 = vld [vmem:[#allocation2 + $0xa] sm:$0xff] }
  0x1a   : > { %v614_v11 = vld [vmem:[#allocation2 + $0x3] sm:$0xff]  ;;  %227 = vrot.lane.b32.xlu0 %v612_v10, %s736_s26  ;;  %v615_v12 = vld [vmem:[#allocation2 + $0xb] sm:$0xff] }
  0x1b   : > { %242 = vrot.lane.b32.xlu1 %v614_v11, %s737_s27  ;;  %v610_v13 = vld [vmem:[#allocation2 + $0x1] sm:$0xff]  ;;  %v622_v14 = vld [vmem:[#allocation2 + $0x9] sm:$0xff]  ;;  %350 = vst.msk [vmem:[#allocation2 + $0x12] sm:$0x3] %vm347_vm2, %v349_v9 }
  0x1c   : > { %348 = vst.msk [vmem:[#allocation2] sm:$0x3] %vm347_vm2, %v346_v8  ;;  %v627_v25 = vld [vmem:[#allocation2 + $0x4] sm:$0xff] }
  0x1d   : > { %219 = vst.msk [vmem:[#allocation3] sm:$0xff] %vm201_vm0, %v610_v13  ;;  %220 = vst.msk [vmem:[#allocation3 + $0x8] sm:$0xff] %vm201_vm0, %v622_v14  ;;  %v353_v35 = vld [vmem:[#allocation2 + $0x8] sm:$0xff] }
  0x1e   : > { %229 = vrot.lane.b32.xlu0 %v613_v15, %s736_s26 }
  0x1f   : > { %244 = vrot.lane.b32.xlu1 %v615_v12, %s737_s27 }
  0x22   : > { %372 = vrot.lane.b32.xlu0 %v612_v10, %s737_s27  ;;  %v626_v24 = vld [vmem:[#allocation2 + $0xb] sm:$0xff] }
  0x23   : > { %362 = vrot.lane.b32.xlu1 %v622_v14, %s736_s26  ;;  %v621_v23 = vld [vmem:[#allocation2 + $0x1] sm:$0xff]  ;;  %v628_v26 = vld [vmem:[#allocation2 + $0xc] sm:$0xff] }
  0x24   : > { %v352_v31 = vld [vmem:[#allocation2] sm:$0xff] }
  0x26   : > { %384 = vrot.lane.b32.xlu0 %v614_v11, %s738_s11 }
  0x27   : > { %374 = vrot.lane.b32.xlu1 %v613_v15, %s737_s27 }
  0x2a   : > { %360 = vrot.lane.b32.xlu0 %v621_v23, %s736_s26 }
  0x2b   : > { %386 = vrot.lane.b32.xlu1 %v626_v24, %s738_s11 }
  0x2e   : > { %399 = vrot.lane.b32.xlu0 %v627_v25, %s739_s20 }
  0x2f   : > { %401 = vrot.lane.b32.xlu1 %v628_v26, %s739_s20 }
  0x8c   : > { %v228_v27 = vpop.permute.xlu0 %227 }
  0x8d   : > { %v243_v28 = vpop.permute.xlu1 %242  ;;  %234 = vst.msk [vmem:[#allocation3] sm:$0xff] %vm233_vm3, %v228_v27 }
  0x8e   : > { %249 = vst.msk [vmem:[#allocation3] sm:$0xff] %vm248_vm4, %v243_v28 }
  0x90   : > { %v230_v29 = vpop.permute.xlu0 %229 }
  0x91   : > { %v245_v30 = vpop.permute.xlu1 %244  ;;  %235 = vst.msk [vmem:[#allocation3 + $0x8] sm:$0xff] %vm233_vm3, %v230_v29 }
  0x92   : > { %250 = vst.msk [vmem:[#allocation3 + $0x8] sm:$0xff] %vm248_vm4, %v245_v30 }
  0x94   : > { %v373_v32 = vpop.permute.xlu0 %372 }
  0x95   : > { %v363_v33 = vpop.permute.xlu1 %362  ;;  %v251_v34 = vld [vmem:[#allocation3] sm:$0xff] }
  0x96   : > { %655 = vmatprep.mubr.msk.f32.mxu0 %vm261_vm5, %v251_v34  ;;  %354 = vst.msk [vmem:[#allocation3] sm:$0xff] %vm201_vm0, %v352_v31 }
  0x98   : > { %v385_v36 = vpop.permute.xlu0 %384 }
  0x99   : > { %v375_v37 = vpop.permute.xlu1 %374  ;;  %v252_v38 = vld [vmem:[#allocation3 + $0x8] sm:$0xff] }
  0x9a   : > { %355 = vst.msk [vmem:[#allocation3 + $0x8] sm:$0xff] %vm201_vm0, %v353_v35  ;;  %656 = vmatmul.mubr.msk.f32.vlgmr.msra.gmra.mrb[0].mxu0 %vm261_vm5, %v252_v38 }
  0x9b   : > { %367 = vst.msk [vmem:[#allocation3 + $0x8] sm:$0xff] %vm233_vm3, %v363_v33 }
  0x9c   : > { %379 = vst.msk [vmem:[#allocation3 + $0x8] sm:$0xff] %vm248_vm4, %v375_v37  ;;  %v361_v39 = vpop.permute.xlu0 %360 }
  0x9d   : > { %v387_v40 = vpop.permute.xlu1 %386  ;;  %366 = vst.msk [vmem:[#allocation3] sm:$0xff] %vm233_vm3, %v361_v39 }
  0x9e   : > { %392 = vst.msk [vmem:[#allocation3 + $0x8] sm:$0xff] %vm390_vm6, %v387_v40 }
  0x9f   : > { %378 = vst.msk [vmem:[#allocation3] sm:$0xff] %vm248_vm4, %v373_v32 }
  0xa0   : > { %391 = vst.msk [vmem:[#allocation3] sm:$0xff] %vm390_vm6, %v385_v36  ;;  %v400_v41 = vpop.permute.xlu0 %399 }
  0xa1   : > { %v402_v42 = vpop.permute.xlu1 %401  ;;  %406 = vst.msk [vmem:[#allocation3] sm:$0xff] %vm405_vm7, %v400_v41 }
  0xa2   : > { %407 = vst.msk [vmem:[#allocation3 + $0x8] sm:$0xff] %vm405_vm7, %v402_v42 }
  0xa8   : > { %v408_v43 = vld [vmem:[#allocation3] sm:$0xff] }
  0xa9   : > { %v409_v44 = vld [vmem:[#allocation3 + $0x8] sm:$0xff]  ;;  %668 = vmatprep.mubr.msk.f32.mxu1 %vm420_vm8, %v408_v43 }
  0xaa   : > { %669 = vmatmul.mubr.msk.f32.vlgmr.msra.gmra.mrb[0].mxu1 %vm420_vm8, %v409_v44 }
 0x16d   : > { %v657_v46 = vpop.f32.mrb[0].mxu0 }
 0x16e   : > { %v340_v47 = vadd.f32 %v657_v46, %v616_v45  ;;  %v334_v48 = vpop.f32.mrb[1].mxu0 }
 0x16f   : > { %v335_v49 = vadd.f32 %v616_v45, %v334_v48 }
 0x170   : > { %620 = vst.msk [vmem:[%s820_s19 + $0x18] sm:$0xff] %vm201_vm0, %v340_v47 }
 0x171   : > { %619 = vst.msk [vmem:[%s820_s19 + $0x10] sm:$0xff] %vm201_vm0, %v335_v49 }
 0x17d   : > { %v670_v51 = vpop.f32.mrb[0].mxu1 }
 0x17e   : > { %v499_v52 = vadd.f32 %v670_v51, %v629_v50  ;;  %v493_v53 = vpop.f32.mrb[1].mxu1 }
 0x17f   : > { %v494_v54 = vadd.f32 %v629_v50, %v493_v53 }
 0x180   : > { %633 = vst.msk [vmem:[%s820_s19 + $0x28] sm:$0xff] %vm201_vm0, %v499_v52 }
 0x181   : > { %632 = vst.msk [vmem:[%s820_s19 + $0x20] sm:$0xff] %vm201_vm0, %v494_v54 }
 0x182 PF: > { %s13_s14 = sadd.s32 1, %s734_s14   ;;  %s863_s12 = smov %s730_s13 }
 0x183   : > { %p10_p5 = scmp.ge.s32.totalorder %s13_s14, 4   ;;  %s864_s13 = smov %s866_s15 }
 0x185   :  { %12 = sbr.rel (!%p10_p5) target bundleno = 2 (0x2), region = 74 }

</bundles_post_ra>
